<compile_context>
chip_gen: v7x
topology: tpu7x:2x2x1
jax: 0.10.0
libtpu: 0.0.40
codegen_flags: <defaults>
</compile_context>

<pallas_src>
import math

import jax
import jax.numpy as jnp
from jax.experimental import pallas as pl
from jax.experimental.pallas import tpu as pltpu


def _qgen_kernel(x_ref, wu_ref, ws_ref, o_ref):
    # x_ref : (1, TB*t, f)     rows are batch-major (batch, time) for this node
    # wu_ref: (f, h*d)         shared weights, constant block index (resident)
    # ws_ref: (1, f, h*d)      per-node weights, constant across inner grid axis
    # o_ref : (TB, 1, h, t, d) reference output layout, written directly
    tb, _, h, t, d = o_ref.shape

    x = x_ref[0]                                   # (M, f) -- free squeeze
    wu = wu_ref[...]                               # (f, h*d)
    ws = ws_ref[0]                                 # (f, h*d)

    # Two tiny-K MXU matmuls (K = in_channels), f32 accumulation.
    y_u = jnp.dot(x, wu, preferred_element_type=jnp.float32)   # (M, h*d)
    y_s = jnp.dot(x, ws, preferred_element_type=jnp.float32)   # (M, h*d)

    prod = (y_u * y_s).astype(o_ref.dtype)         # (M, h*d), one bulk VPU pass

    # Per-head stores into the (b, n, h, t, d) layout: static lane slices +
    # sublane-only reshape (free when t % 8 == 0).  Stores are d-wide (masked
    # when d < 128) but avoid a second HBM round trip for a transpose.
    for hh in range(h):
        o_ref[:, 0, hh, :, :] = prod[:, hh * d:(hh + 1) * d].reshape(tb, t, d)


def _round_up(v, m):
    return -(-v // m) * m


def _padded_tile_bytes(block_shape, itemsize, sub):
    """VMEM footprint of one block: last dim -> 128 lanes, 2nd-to-last -> sublane mult."""
    lead = 1
    for s in block_shape[:-2]:
        lead *= s
    rows = _round_up(block_shape[-2], sub)
    cols = _round_up(block_shape[-1], 128)
    return lead * rows * cols * itemsize


def query_generator(x, W_u, W_s):
    """x: (b, n, t, f); W_u: (h, f, 1, d); W_s: (h, f, n, d) -> (b, n, h, t, d)."""
    b, n, t, f = x.shape
    h, f_w, one, d = W_u.shape
    assert f_w == f and one == 1 and W_s.shape == (h, f, n, d)
    hd = h * d
    dtype = x.dtype
    itemsize = jnp.dtype(dtype).itemsize
    sub = 8 * max(1, 4 // itemsize)          # sublane multiple: 8 (f32), 16 (bf16)

    # --- Weight packing (in a real model: do once at parameter-init time). ---
    # No n-fold HBM broadcast of W_u: it is a separate, grid-constant input.
    wu_packed = jnp.transpose(W_u[:, :, 0, :], (1, 0, 2)).reshape(f, hd)      # (f, h*d)
    ws_packed = jnp.transpose(W_s, (2, 1, 0, 3)).reshape(n, f, hd)            # (n, f, h*d)

    # --- Tile selection: M = tb * t, target ~512 rows; tb*t must be a multiple
    # of 8 (unless the tile covers the whole batch). ---
    g = 8 // math.gcd(t, 8)                  # tb granularity for 8-row alignment
    target_tb = _round_up(max(1, 512 // max(t, 1)), g)
    tb = b if target_tb >= b else target_tb

    # --- Padded-size VMEM budget; shrink tb if the working set would exceed the
    # cap (headroom for v7x's 64 MiB VMEM). ---
    def working_set(tb_):
        m = tb_ * t
        x_tile = _padded_tile_bytes((1, m, f), itemsize, sub)
        o_tile = _padded_tile_bytes((tb_, 1, h, t, d), itemsize, sub)
        ws_tile = _padded_tile_bytes((1, f, hd), itemsize, sub)
        wu_tile = _padded_tile_bytes((f, hd), itemsize, sub)
        return 2 * (x_tile + o_tile + ws_tile) + 2 * wu_tile + (2 << 20)

    vmem_cap = 40 << 20
    while working_set(tb) > vmem_cap and tb > g:
        tb = max(g, ((tb - 1) // g) * g)     # step down, keep multiple of g

    b_p = _round_up(b, tb)
    b_tiles = b_p // tb

    # v7x: keep the total grid-step count even so the 2 TensorCores stay balanced.
    if (n * b_tiles) % 2 == 1 and tb >= 2 * g and tb % 2 == 0 and (tb // 2) % g == 0:
        tb //= 2
        b_p = _round_up(b, tb)
        b_tiles = b_p // tb

    vmem_limit = int(min(max(int(1.5 * working_set(tb)), 16 << 20), vmem_cap))

    # --- Present x as (n, b_p*t, f): node-major so the per-node weight block is
    # constant across the inner batch axis, rows batch-major within a tile. ---
    x_t = jnp.transpose(x, (1, 0, 2, 3))                         # (n, b, t, f)
    if b_p != b:
        x_t = jnp.pad(x_t, ((0, 0), (0, b_p - b), (0, 0), (0, 0)))
    x_t = x_t.reshape(n, b_p * t, f)

    grid = (n, b_tiles)  # node axis OUTER (weight residency), batch tile INNER

    out = pl.pallas_call(
        _qgen_kernel,
        out_shape=jax.ShapeDtypeStruct((b_p, n, h, t, d), dtype),
        grid=grid,
        in_specs=[
            # x tile: TB batches (x t steps) of the current node
            pl.BlockSpec((1, tb * t, f), lambda ni, bi: (ni, bi, 0)),
            # shared W_u: constant block index -> VMEM-resident for whole grid
            pl.BlockSpec((f, hd), lambda ni, bi: (0, 0)),
            # per-node W_s: constant across inner batch axis -> no per-step re-DMA
            pl.BlockSpec((1, f, hd), lambda ni, bi: (ni, 0, 0)),
        ],
        # Reference layout written directly; no post-kernel transpose.
        out_specs=pl.BlockSpec((tb, 1, h, t, d), lambda ni, bi: (bi, ni, 0, 0, 0)),
        compiler_params=pltpu.CompilerParams(
            dimension_semantics=("parallel", "parallel"),
            vmem_limit_bytes=vmem_limit,
        ),
        # Note: pipeline depth (pl.Buffered(3)) is a further sweep knob for the
        # x/out specs on DMA-latency-limited shapes.
    )(x_t, wu_packed, ws_packed)

    if b_p != b:
        out = out[:b]
    return out


def _xavier_normal(key, shape):
    # PyTorch xavier_normal_ for a 4D tensor: fan_in = shape[1]*prod(shape[2:]),
    # fan_out = shape[0]*prod(shape[2:]); std = sqrt(2/(fan_in+fan_out)).
    receptive = 1
    for s in shape[2:]:
        receptive *= s
    fan_in = shape[1] * receptive
    fan_out = shape[0] * receptive
    std = math.sqrt(2.0 / (fan_in + fan_out))
    return std * jax.random.normal(key, shape, dtype=jnp.float32)


if __name__ == "__main__":
    # Small, module-consistent shapes; h*d = 128, t*? kept modest.
    heads, dqk, num_nodes, in_channels = 4, 32, 4, 8
    batch, time_steps = 4, 8

    key = jax.random.PRNGKey(0)
    k_x, k_wu, k_ws = jax.random.split(key, 3)

    x = jax.random.normal(
        k_x, (batch, num_nodes, time_steps, in_channels), dtype=jnp.float32
    )
    W_u = _xavier_normal(k_wu, (heads, in_channels, 1, dqk))
    W_s = _xavier_normal(k_ws, (heads, in_channels, num_nodes, dqk))

    out = query_generator(x, W_u, W_s)
    out = jax.block_until_ready(out)

    # Reference check (plain JAX einsum, mirrors the torch einsums).
    W_u_rep = jnp.broadcast_to(W_u, (heads, in_channels, num_nodes, dqk))
    x_u_ref = jnp.einsum("bntf,hfnd->bnhtd", x, W_u_rep)
    x_s_ref = jnp.einsum("bntf,hfnd->bnhtd", x, W_s)
    ref = x_u_ref * x_s_ref
    assert out.shape == (batch, num_nodes, heads, time_steps, dqk)
    assert jnp.allclose(out, ref, atol=1e-5, rtol=1e-5)

    print("KERNEL_OK")
</pallas_src>

<mosaic_0001>
module attributes {stable_mosaic.version = 11 : i64} {
  func.func @_qgen_kernel(%arg0: i32, %arg1: i32, %arg2: memref<1x32x8xf32, #tpu.memory_space<vmem>>, %arg3: memref<8x128xf32, #tpu.memory_space<vmem>>, %arg4: memref<1x8x128xf32, #tpu.memory_space<vmem>>, %arg5: memref<4x1x4x8x32xf32, #tpu.memory_space<vmem>>) attributes {dimension_semantics = [#tpu.dimension_semantics<parallel>, #tpu.dimension_semantics<parallel>], iteration_bounds = array<i64: 4, 1>, scalar_prefetch = 0 : i64, scratch_operands = 0 : i64, tpu.core_type = #tpu.core_type<tc>, window_params = [{transform_indices = @transform_0, window_bounds = array<i64: 1, 32, 8>}, {pipeline_mode = #tpu.pipeline_mode<synchronous>, transform_indices = @transform_1, window_bounds = array<i64: 8, 128>}, {transform_indices = @transform_2, window_bounds = array<i64: 1, 8, 128>}, {transform_indices = @transform_3, window_bounds = array<i64: 4, 1, 4, 8, 32>}]} {
    %c0 = arith.constant 0 : index
    %c0_0 = arith.constant 0 : index
    %c0_1 = arith.constant 0 : index
    %0 = vector.load %arg2[%c0, %c0_0, %c0_1] : memref<1x32x8xf32, #tpu.memory_space<vmem>>, vector<1x32x8xf32>
    %1 = vector.shape_cast %0 : vector<1x32x8xf32> to vector<32x8xf32>
    %c0_2 = arith.constant 0 : index
    %c0_3 = arith.constant 0 : index
    %2 = vector.load %arg3[%c0_2, %c0_3] : memref<8x128xf32, #tpu.memory_space<vmem>>, vector<8x128xf32>
    %c0_4 = arith.constant 0 : index
    %c0_5 = arith.constant 0 : index
    %c0_6 = arith.constant 0 : index
    %3 = vector.load %arg4[%c0_4, %c0_5, %c0_6] : memref<1x8x128xf32, #tpu.memory_space<vmem>>, vector<1x8x128xf32>
    %4 = vector.shape_cast %3 : vector<1x8x128xf32> to vector<8x128xf32>
    %cst = arith.constant dense<0.000000e+00> : vector<32x128xf32>
    %5 = tpu.matmul %1, %2, %cst {dimension_numbers = #tpu.dot_dimension_numbers<[1], [0], [0], [1], [0, 0, 1, 1], [], []>} : vector<32x8xf32>, vector<8x128xf32>, vector<32x128xf32> -> vector<32x128xf32>
    %cst_7 = arith.constant dense<0.000000e+00> : vector<32x128xf32>
    %6 = tpu.matmul %1, %4, %cst_7 {dimension_numbers = #tpu.dot_dimension_numbers<[1], [0], [0], [1], [0, 0, 1, 1], [], []>} : vector<32x8xf32>, vector<8x128xf32>, vector<32x128xf32> -> vector<32x128xf32>
    %7 = arith.mulf %5, %6 : vector<32x128xf32>
    %8 = vector.extract_strided_slice %7 {offsets = [0, 0], sizes = [32, 32], strides = [1, 1]} : vector<32x128xf32> to vector<32x32xf32>
    %9 = vector.shape_cast %8 : vector<32x32xf32> to vector<4x8x32xf32>
    %c0_8 = arith.constant 0 : index
    %c0_9 = arith.constant 0 : index
    %c0_10 = arith.constant 0 : index
    %c0_11 = arith.constant 0 : index
    %c0_12 = arith.constant 0 : index
    %10 = vector.load %arg5[%c0_8, %c0_9, %c0_10, %c0_11, %c0_12] : memref<4x1x4x8x32xf32, #tpu.memory_space<vmem>>, vector<4x1x1x8x32xf32>
    %11 = vector.shape_cast %10 : vector<4x1x1x8x32xf32> to vector<4x8x32xf32>
    %12 = vector.shape_cast %9 : vector<4x8x32xf32> to vector<4x1x1x8x32xf32>
    tpu.vector_store %arg5[%c0_8, %c0_9, %c0_10, %c0_11, %c0_12], %12 {strides = array<i32>} : memref<4x1x4x8x32xf32, #tpu.memory_space<vmem>>, vector<4x1x1x8x32xf32>,
    %13 = vector.extract_strided_slice %7 {offsets = [0, 32], sizes = [32, 32], strides = [1, 1]} : vector<32x128xf32> to vector<32x32xf32>
    %14 = vector.shape_cast %13 : vector<32x32xf32> to vector<4x8x32xf32>
    %c0_13 = arith.constant 0 : index
    %c0_14 = arith.constant 0 : index
    %c1 = arith.constant 1 : index
    %c0_15 = arith.constant 0 : index
    %c0_16 = arith.constant 0 : index
    %15 = vector.load %arg5[%c0_13, %c0_14, %c1, %c0_15, %c0_16] : memref<4x1x4x8x32xf32, #tpu.memory_space<vmem>>, vector<4x1x1x8x32xf32>
    %16 = vector.shape_cast %15 : vector<4x1x1x8x32xf32> to vector<4x8x32xf32>
    %17 = vector.shape_cast %14 : vector<4x8x32xf32> to vector<4x1x1x8x32xf32>
    tpu.vector_store %arg5[%c0_13, %c0_14, %c1, %c0_15, %c0_16], %17 {strides = array<i32>} : memref<4x1x4x8x32xf32, #tpu.memory_space<vmem>>, vector<4x1x1x8x32xf32>,
    %18 = vector.extract_strided_slice %7 {offsets = [0, 64], sizes = [32, 32], strides = [1, 1]} : vector<32x128xf32> to vector<32x32xf32>
    %19 = vector.shape_cast %18 : vector<32x32xf32> to vector<4x8x32xf32>
    %c0_17 = arith.constant 0 : index
    %c0_18 = arith.constant 0 : index
    %c2 = arith.constant 2 : index
    %c0_19 = arith.constant 0 : index
    %c0_20 = arith.constant 0 : index
    %20 = vector.load %arg5[%c0_17, %c0_18, %c2, %c0_19, %c0_20] : memref<4x1x4x8x32xf32, #tpu.memory_space<vmem>>, vector<4x1x1x8x32xf32>
    %21 = vector.shape_cast %20 : vector<4x1x1x8x32xf32> to vector<4x8x32xf32>
    %22 = vector.shape_cast %19 : vector<4x8x32xf32> to vector<4x1x1x8x32xf32>
    tpu.vector_store %arg5[%c0_17, %c0_18, %c2, %c0_19, %c0_20], %22 {strides = array<i32>} : memref<4x1x4x8x32xf32, #tpu.memory_space<vmem>>, vector<4x1x1x8x32xf32>,
    %23 = vector.extract_strided_slice %7 {offsets = [0, 96], sizes = [32, 32], strides = [1, 1]} : vector<32x128xf32> to vector<32x32xf32>
    %24 = vector.shape_cast %23 : vector<32x32xf32> to vector<4x8x32xf32>
    %c0_21 = arith.constant 0 : index
    %c0_22 = arith.constant 0 : index
    %c3 = arith.constant 3 : index
    %c0_23 = arith.constant 0 : index
    %c0_24 = arith.constant 0 : index
    %25 = vector.load %arg5[%c0_21, %c0_22, %c3, %c0_23, %c0_24] : memref<4x1x4x8x32xf32, #tpu.memory_space<vmem>>, vector<4x1x1x8x32xf32>
    %26 = vector.shape_cast %25 : vector<4x1x1x8x32xf32> to vector<4x8x32xf32>
    %27 = vector.shape_cast %24 : vector<4x8x32xf32> to vector<4x1x1x8x32xf32>
    tpu.vector_store %arg5[%c0_21, %c0_22, %c3, %c0_23, %c0_24], %27 {strides = array<i32>} : memref<4x1x4x8x32xf32, #tpu.memory_space<vmem>>, vector<4x1x1x8x32xf32>,
    return
  }
  func.func @transform_0(%arg0: i32, %arg1: i32) -> (i32, i32, i32) {
    %c0_i32 = arith.constant 0 : i32
    %c0_i32_0 = arith.constant 0 : i32
    return %arg0, %arg1, %c0_i32 : i32, i32, i32
  }
  func.func @transform_1(%arg0: i32, %arg1: i32) -> (i32, i32) {
    %c0_i32 = arith.constant 0 : i32
    %c0_i32_0 = arith.constant 0 : i32
    %c0_i32_1 = arith.constant 0 : i32
    return %c0_i32, %c0_i32_0 : i32, i32
  }
  func.func @transform_2(%arg0: i32, %arg1: i32) -> (i32, i32, i32) {
    %c0_i32 = arith.constant 0 : i32
    %c0_i32_0 = arith.constant 0 : i32
    %c0_i32_1 = arith.constant 0 : i32
    return %arg0, %c0_i32, %c0_i32_0 : i32, i32, i32
  }
  func.func @transform_3(%arg0: i32, %arg1: i32) -> (i32, i32, i32, i32, i32) {
    %c0_i32 = arith.constant 0 : i32
    %c0_i32_0 = arith.constant 0 : i32
    %c0_i32_1 = arith.constant 0 : i32
    %c0_i32_2 = arith.constant 0 : i32
    return %arg1, %arg0, %c0_i32, %c0_i32_0, %c0_i32_1 : i32, i32, i32, i32, i32
  }
}

</mosaic_0001>

<bundles_post_ra>
// kernel: tpu_custom_call.1
= control target key start
LH: loop header
LB: loop body
LE: loop exit
PB: predicated region body
PF: predicated region fallthrough
CT: control target
= control target key end

     0   :  { %8 = vsyncpa [#allocation3], 0  ;;  %s976_s0 = inlined_call_operand.vmem [shape: f32[4,32,8], index: 0, kind: input, shape index: {}]   ;;  %s977_s1 = inlined_call_operand.vmem [shape: f32[8,128], index: 1, kind: input, shape index: {}]   ;;  %s978_s2 = inlined_call_operand.vmem [shape: f32[4,8,128], index: 2, kind: input, shape index: {}]   ;;  %s979_s3 = inlined_call_operand.hbm [shape: f32[4,4,4,8,32], index: 3, kind: output, shape index: {}]  }
   0x1   :  { %10 = vsyncpa [#allocation3 + $0x1], 0  ;;  %s822_s12 = smov 0   ;;  %s824_s13 = smov 0  }
   0x2   :  { %s826_s14 = smov 0   ;;  %s828_s15 = smov 0  }
   0x3   :  { %s830_s16 = smov 0   ;;  %s832_s17 = smov 0  }
   0x4 LB: > { %s607_s18 = sadd.s32 4294967295, %s790_s17   ;;  %s608_s19 = sadd.s32 4294967294, %s790_s17   ;;  %s790_s17 = sphi %s832_s17, %s16_s17   ;;  %s786_s16 = sphi %s830_s16, %s986_s16   ;;  %s782_s15 = sphi %s828_s15, %s985_s15   ;;  %s778_s14 = sphi %s826_s14, %s984_s14   ;;  %s774_s13 = sphi %s824_s13, %s983_s13   ;;  %s770_s12 = sphi %s822_s12, %s982_s12  }
   0x5   : > { %s28_s20 = sadd.s32 1, %s786_s16  ;;  %s112_s21 = sadd.s32 1, %s778_s14 }
   0x6   : > { %p30_p0 = scmp.ge.s32.totalorder %s28_s20, 4  ;;  %p122_p1 = scmp.ne.s32.totalorder %s778_s14, %s774_s13 }
   0x7   : > { %p123_p2 = scmp.eq.s32.totalorder %s607_s18, 3  ;;  %p128_p3 = scmp.ne.s32.totalorder %s774_s13, %s770_s12 }
   0x8   : > { %s988_s20 = smov (%p30_p0, %s28_s20), 0  ;;  %p129_p5 = scmp.eq.s32.totalorder %s608_s19, 3 }
   0x9   : > { %p862_p4 = por %p123_p2, %p122_p1  ;;  %s108_s23 = ssub.s32 %s786_s16, %s988_s20 }
   0xa   : > { %p611_p6 = scmp.ge.s32.totalorder %s790_s17, 1  ;;  %p110_p7 = scmp.eq.s32.totalorder %s108_s23, 0 }
   0xb   : > { %p869_p8 = por %p129_p5, %p128_p3  ;;  %p170_p9 = scmp.lt.s32.totalorder %s790_s17, 5 }
   0xc   : > { %s875_s25 = scalar_select %p110_p7, %s778_s14, %s112_s21  }
   0xd   : > { %p171_p10 = pnand %p611_p6, %p170_p9 }
   0xe   : > { %v221_v0 = vld [vmem:[%s977_s1] sm:$0xff] (!%p171_p10)  ;;  %p203_p11 = scmp.lt.s32.totalorder (!%p171_p10), %s782_s15, 3  ;;  %vm223_vm0 = vcmask (!%p171_p10), 64512   ;;  %s199_s10 = sand.u32 (!%p171_p10), 1, %s774_s13   ;;  %vm410_vm1 = vcmask (!%p171_p10), 261120  }
   0xf   : > { %174 = sbr.rel (%p171_p10) target bundleno = 389 (0x185), region = 32  ;;  %653 = vmatprep.subr.mxu0 (!%p171_p10), %v221_v0  ;;  %s612_s11 = sshll.u32 (!%p171_p10), %s199_s10, 7 }
  0x10   : > { %654 = vmatpush3.msra.mxu0 (!%p171_p10), %v221_v0  ;;  %s899_s18 = scalar_lea.vmem (!%p171_p10), [#allocation2], %s612_s11  ;;  %s792_s19 = smov (!%p171_p10), 64  }
  0x11   : > { %s793_s21 = smov (!%p171_p10), 96   ;;  %s794_s23 = smov (!%p171_p10), 32  }
  0x12   : > { %s471_s26 = scalar_lea.sflag (!%p171_p10), [#allocation3], %s199_s10 }
  0x16   : > { %s204_s28 = scalar_select %p203_p11, %s782_s15, 3 }
  0x18   : > { %s641_s29 = sshll.u32 %s204_s28, 5  ;;  %s615_s30 = sshll.u32 %s204_s28, 3 }
  0x19   : > { %s210_s6 = scalar_lea.vmem %s976_s0, %s641_s29  ;;  %s215_s9 = scalar_lea.vmem %s978_s2, %s615_s30 }
  0x1a   : > { %v217_v1 = vld [vmem:[%s210_s6] sm:$0xff]  ;;  %v218_v3 = vld [vmem:[%s210_s6 + $0x8] sm:$0xff]  ;;  %v219_v4 = vld [vmem:[%s210_s6 + $0x10] sm:$0xff] }
  0x1b   : > { %v222_v2 = vld [vmem:[%s215_s9] sm:$0xff]  ;;  %655 = vmatprep.mubr.msk.f32.mxu0 %vm223_vm0, %v217_v1  ;;  %663 = vmatprep.mubr.msk.f32.mxu1 %vm223_vm0, %v217_v1  ;;  %v220_v5 = vld [vmem:[%s210_s6 + $0x18] sm:$0xff] }
  0x1c   : > { %661 = vmatprep.subr.mxu1 %v222_v2  ;;  %656 = vmatmul.mubr.msk.f32.vlgmr.msra.gmra.mrb[0].mxu0 %vm223_vm0, %v218_v3 }
  0x1d   : > { %662 = vmatpush3.msra.mxu1 %v222_v2  ;;  %658 = vmatprep.mubr.msk.f32.mxu0 %vm223_vm0, %v219_v4 }
  0x1e   : > { %664 = vmatmul.mubr.msk.f32.vlgmr.msra.gmra.mrb[0].mxu1 %vm223_vm0, %v218_v3 }
  0x1f   : > { %666 = vmatprep.mubr.msk.f32.mxu1 %vm223_vm0, %v219_v4 }
  0x20   : > { %659 = vmatmul.mubr.msk.f32.gmra.mrb[2].mxu0 %vm223_vm0, %v220_v5 }
  0x22   : > { %667 = vmatmul.mubr.msk.f32.gmra.mrb[2].mxu1 %vm223_vm0, %v220_v5 }
  0xef   : > { %v657_v6 = vpop.f32.mrb[0].mxu0 }
  0xf0   : > { %v302_v7 = vpop.f32.mrb[1].mxu0 }
  0xf1   : > { %v665_v8 = vpop.f32.mrb[0].mxu1 }
  0xf2   : > { %v407_v9 = vmul.f32 %v665_v8, %v657_v6  ;;  %v387_v10 = vpop.f32.mrb[1].mxu1 }
  0xf3   : > { %v406_v11 = vmul.f32 %v387_v10, %v302_v7  ;;  %v660_v12 = vpop.f32.mrb[2].mxu0 }
  0xf4   : > { %412 = vst.msk [vmem:[%s899_s18 + $0x20] sm:$0xff] %vm410_vm1, %v407_v9  ;;  %438 = vrot.lane.b32.xlu1 %v407_v9, %s792_s19  ;;  %421 = vrot.lane.b32.xlu0 %v407_v9, %s793_s21  ;;  %v312_v13 = vpop.f32.mrb[3].mxu0 }
  0xf5   : > { %411 = vst.msk [vmem:[%s899_s18] sm:$0xff] %vm410_vm1, %v406_v11  ;;  %v668_v14 = vpop.f32.mrb[2].mxu1 }
  0xf6   : > { %v409_v15 = vmul.f32 %v668_v14, %v660_v12  ;;  %v397_v16 = vpop.f32.mrb[3].mxu1 }
  0xf7   : > { %v408_v17 = vmul.f32 %v397_v16, %v312_v13 }
  0xf8   : > { %455 = vrot.lane.b32.xlu1 %v407_v9, %s794_s23  ;;  %419 = vrot.lane.b32.xlu0 %v406_v11, %s793_s21  ;;  %414 = vst.msk [vmem:[%s899_s18 + $0x60] sm:$0xff] %vm410_vm1, %v409_v15 }
  0xf9   : > { %413 = vst.msk [vmem:[%s899_s18 + $0x40] sm:$0xff] %vm410_vm1, %v408_v17 }
  0xfc   : > { %436 = vrot.lane.b32.xlu0 %v406_v11, %s792_s19  ;;  %425 = vrot.lane.b32.xlu1 %v409_v15, %s793_s21 }
 0x100   : > { %453 = vrot.lane.b32.xlu0 %v406_v11, %s794_s23  ;;  %442 = vrot.lane.b32.xlu1 %v409_v15, %s792_s19 }
 0x104   : > { %440 = vrot.lane.b32.xlu0 %v408_v17, %s792_s19  ;;  %423 = vrot.lane.b32.xlu1 %v408_v17, %s793_s21 }
 0x108   : > { %457 = vrot.lane.b32.xlu0 %v408_v17, %s794_s23  ;;  %459 = vrot.lane.b32.xlu1 %v409_v15, %s794_s23 }
 0x166   : > { %v439_v18 = vpop.permute.xlu1 %438  ;;  %v422_v19 = vpop.permute.xlu0 %421 }
 0x167   : > { %629 = vst.msk [vmem:[%s899_s18 + $0x30] sm:$0xff] %vm410_vm1, %v439_v18  ;;  %625 = vst.msk [vmem:[%s899_s18 + $0x28] sm:$0xff] %vm410_vm1, %v422_v19 }
 0x16a   : > { %v456_v20 = vpop.permute.xlu1 %455  ;;  %v420_v21 = vpop.permute.xlu0 %419 }
 0x16b   : > { %633 = vst.msk [vmem:[%s899_s18 + $0x38] sm:$0xff] %vm410_vm1, %v456_v20  ;;  %624 = vst.msk [vmem:[%s899_s18 + $0x8] sm:$0xff] %vm410_vm1, %v420_v21 }
 0x16e   : > { %v437_v22 = vpop.permute.xlu0 %436  ;;  %v426_v23 = vpop.permute.xlu1 %425 }
 0x16f   : > { %628 = vst.msk [vmem:[%s899_s18 + $0x10] sm:$0xff] %vm410_vm1, %v437_v22  ;;  %627 = vst.msk [vmem:[%s899_s18 + $0x68] sm:$0xff] %vm410_vm1, %v426_v23 }
 0x172   : > { %v454_v24 = vpop.permute.xlu0 %453  ;;  %v443_v25 = vpop.permute.xlu1 %442 }
 0x173   : > { %632 = vst.msk [vmem:[%s899_s18 + $0x18] sm:$0xff] %vm410_vm1, %v454_v24  ;;  %631 = vst.msk [vmem:[%s899_s18 + $0x70] sm:$0xff] %vm410_vm1, %v443_v25 }
 0x176   : > { %v441_v26 = vpop.permute.xlu0 %440  ;;  %v424_v27 = vpop.permute.xlu1 %423 }
 0x177   : > { %630 = vst.msk [vmem:[%s899_s18 + $0x50] sm:$0xff] %vm410_vm1, %v441_v26  ;;  %626 = vst.msk [vmem:[%s899_s18 + $0x48] sm:$0xff] %vm410_vm1, %v424_v27 }
 0x17a   : > { %v458_v28 = vpop.permute.xlu0 %457  ;;  %v460_v29 = vpop.permute.xlu1 %459 }
 0x17b   : > { %634 = vst.msk [vmem:[%s899_s18 + $0x58] sm:$0xff] %vm410_vm1, %v458_v28  ;;  %635 = vst.msk [vmem:[%s899_s18 + $0x78] sm:$0xff] %vm410_vm1, %v460_v29 }
 0x17c   : > { %s642_s27 = sshll.u32 %s782_s15, 9  ;;  %s503_s28 = sshll.u32 %s899_s18, 4  ;;  %s504_s28 = int_to_ptr.vmem [resolvable:$true] %s503_s28 }
 0x17d   : > { %s486_s4 = scalar_lea.hbm %s979_s3, %s642_s27  ;;  %s795_s5 = smov 512  }
 0x17e   : > { %669 = sst [smem:[#allocation5]] (%p862_p4), %s795_s5  ;;  %s796_s6 = smov 2048  }
 0x17f   : > { %670 = sst [smem:[#allocation5 + $0x1]] (%p862_p4), %s796_s6  ;;  %s797_s7 = smov 4  }
 0x180   : > { %671 = sst [smem:[#allocation5 + $0x2]] (%p862_p4), %s797_s7  ;;  %s798_s8 = smov 128  }
 0x181   : > { %672 = sst [smem:[#allocation5 + $0x3]] (%p862_p4), %s798_s8  ;;  %s799_s15 = smov 8  }
 0x182   : > { %673 = sst [smem:[#allocation5 + $0x4]] (%p862_p4), %s798_s8  ;;  %s800_s9 = smov [#allocation4]  }
 0x183   : > { %674 = sst [smem:[#allocation5 + $0x5]] (%p862_p4), %s799_s15  ;;  %s801_s10 = smov 0  }
 0x184   : > { %675 = dma.general (%p862_p4), %s504_s28, 2048, %s486_s4, %s471_s26, %s800_s9, [#allocation5], %s801_s10, 0  }
 0x185 PF: > { %p681_p12 = scmp.ge.s32.totalorder %s790_s17, 2  ;;  %s531_s11 = sand.u32 1, %s770_s12  }
 0x186   : > { %s532_s18 = scalar_lea.sflag [#allocation3], %s531_s11 }
 0x187   : > { %p678_p13 = pnand %p681_p12, %p869_p8 }
 0x189   : > { %765 = dma.done.wait (!%p678_p13), %s532_s18, 2048  }
 0x18a   : > { %767 = vsyncadd (!%p678_p13), %s532_s18, 4294965248  ;;  %s16_s17 = sadd.s32 1, %s790_s17   ;;  %s982_s12 = smov %s774_s13 }
 0x18b   : > { %p13_p0 = scmp.ge.s32.totalorder %s16_s17, 6   ;;  %s983_s13 = smov %s778_s14 }
 0x18c   : > { %s984_s14 = smov %s875_s25  ;;  %s985_s15 = smov %s786_s16 }
 0x18d   : > { %s986_s16 = smov %s988_s20  ;;  %15 = sbr.rel (!%p13_p0) target bundleno = 4 (0x4), region = 78 }
 0x194   :  { %537 = vsyncpa [#allocation3], 1 }
 0x195   :  { %539 = vsyncpa [#allocation3 + $0x1], 1 }

</bundles_post_ra>
